<compile_context>
chip_gen: v5e
topology: v5e:2x2
jax: 0.10.0
libtpu: 0.0.40
codegen_flags: <defaults>
</compile_context>

<pallas_src>
import jax
import jax.numpy as jnp
from jax.experimental import pallas as pl
from jax.experimental.pallas import tpu as pltpu


def rnn_fc_kernel(x_ref, wih_ref, whh_ref, b_ref, wfc_ref, bfc_ref, out_ref):
    """Fused RNN(tanh) over time + Linear(seq_len -> pred_len) on the time axis.

    x_ref:   (S*B, C) VMEM f32, time-major rows (row block t = timestep t)
    wih_ref: (C, C)   VMEM bf16, = W_ih^T
    whh_ref: (C, C)   VMEM bf16, = W_hh^T
    b_ref:   (1, C)   VMEM f32,  = b_ih + b_hh (pre-summed)
    wfc_ref: (P, S)   SMEM f32,  fc.weight (scalar reads)
    bfc_ref: (P,)     SMEM f32,  fc.bias   (scalar reads)
    out_ref: (B, P*C) VMEM f32,  lane-dense output; out[b, p*C + c]
    """
    SB, C = x_ref.shape
    P, S = wfc_ref.shape
    B = SB // S

    # --- hoisted input projection: one bf16 MXU matmul for all timesteps ----
    # (the .astype cast is a VPU op off the serial critical path)
    xb = x_ref[...].astype(jnp.bfloat16)
    xw = jnp.dot(xb, wih_ref[...],
                 preferred_element_type=jnp.float32) + b_ref[...]   # (S*B, C) f32
    whh = whh_ref[...]                                              # bf16, invariant

    # --- recurrence, fully unrolled (S static & small => static slices,
    #     static SMEM indices; live state is a few vregs) --------------------
    # t = 0: previous hidden state is zero, so skip the W_hh matmul entirely.
    h = jnp.tanh(xw[0:B, :])                                        # (B, C) f32
    # online fc accumulation; bias folded into the initial value.
    acc = [bfc_ref[p] + wfc_ref[p, 0] * h for p in range(P)]
    for t in range(1, S):
        z = jnp.dot(h.astype(jnp.bfloat16), whh,
                    preferred_element_type=jnp.float32)             # single-pass bf16
        h = jnp.tanh(xw[t * B:(t + 1) * B, :] + z)                  # f32 tanh (v5e-safe)
        for p in range(P):
            # P scalar*vreg FMAs per step; free filler under the matmul.
            acc[p] = acc[p] + wfc_ref[p, t] * h

    # --- single lane-dense store: last dim = P*C (128 lanes here) -----------
    out_ref[...] = jnp.concatenate(acc, axis=1)                     # (B, P*C)


def prepare_params(w_ih, w_hh, b_ih, b_hh, w_fc, b_fc):
    """One-time parameter layout/dtype prep (outside the per-call path)."""
    C = w_ih.shape[0]
    return {
        "wih_t": jnp.asarray(w_ih, jnp.float32).T.astype(jnp.bfloat16),   # (C, C) bf16
        "whh_t": jnp.asarray(w_hh, jnp.float32).T.astype(jnp.bfloat16),   # (C, C) bf16
        "b_sum": (jnp.asarray(b_ih, jnp.float32)
                  + jnp.asarray(b_hh, jnp.float32)).reshape(1, C),        # (1, C) f32
        "w_fc": jnp.asarray(w_fc, jnp.float32),                           # (P, S) f32
        "b_fc": jnp.asarray(b_fc, jnp.float32),                           # (P,)  f32
    }


@jax.jit
def rnn_linear_forward(x, params):
    """Equivalent of Model.forward: nn.RNN(C, C) then nn.Linear(S, P) over time."""
    B, S, C = x.shape
    P = params["w_fc"].shape[0]

    # Tiny XLA-side layout transform: time-major contiguous 2D view (S*B, C).
    x_tm = jnp.transpose(x, (1, 0, 2)).reshape(S * B, C)

    # Advisory cost so XLA can overlap this latency-bound custom call.
    flops = 2 * B * S * C * C + 2 * (S - 1) * B * C * C + 2 * P * S * B * C
    transcendentals = S * B * C
    bytes_accessed = (S * B * C * 4            # x
                      + 2 * C * C * 2 + C * 4  # weights (bf16) + bias (f32)
                      + P * S * 4 + P * 4      # fc
                      + B * P * C * 4)         # out

    out_flat = pl.pallas_call(
        rnn_fc_kernel,
        out_shape=jax.ShapeDtypeStruct((B, P * C), jnp.float32),
        in_specs=[
            pl.BlockSpec(memory_space=pltpu.MemorySpace.VMEM),   # x (time-major 2D)
            pl.BlockSpec(memory_space=pltpu.MemorySpace.VMEM),   # W_ih^T (bf16)
            pl.BlockSpec(memory_space=pltpu.MemorySpace.VMEM),   # W_hh^T (bf16)
            pl.BlockSpec(memory_space=pltpu.MemorySpace.VMEM),   # b_ih + b_hh
            pl.BlockSpec(memory_space=pltpu.MemorySpace.SMEM),   # fc.weight
            pl.BlockSpec(memory_space=pltpu.MemorySpace.SMEM),   # fc.bias
        ],
        out_specs=pl.BlockSpec(memory_space=pltpu.MemorySpace.VMEM),
        cost_estimate=pl.CostEstimate(
            flops=flops,
            transcendentals=transcendentals,
            bytes_accessed=bytes_accessed),
    )(x_tm, params["wih_t"], params["whh_t"], params["b_sum"],
      params["w_fc"], params["b_fc"])

    # contiguous row-major reshape (bitcast) -> (B, P, C); no transpose needed.
    return out_flat.reshape(B, P, C)


def ref_forward(x, w_ih, w_hh, b_ih, b_hh, w_fc, b_fc):
    """Pure-JAX f32 reference mirroring the PyTorch forward."""
    B, S, C = x.shape
    h = jnp.zeros((B, C), jnp.float32)
    outs = []
    for t in range(S):
        h = jnp.tanh(x[:, t, :] @ w_ih.T + b_ih + h @ w_hh.T + b_hh)
        outs.append(h)
    rnn_out = jnp.stack(outs, axis=1)                        # (B, S, C)
    return jnp.einsum('bsc,ps->bpc', rnn_out, w_fc) + b_fc[None, :, None]


if __name__ == "__main__":
    # configs: enc_in = 32, seq_len = 8, pred_len = 4
    B, S, C, P = 2, 8, 32, 4

    key = jax.random.PRNGKey(0)
    ks = jax.random.split(key, 7)
    scale = 1.0 / jnp.sqrt(jnp.float32(C))

    x     = jax.random.normal(ks[0], (B, S, C), jnp.float32)
    w_ih  = jax.random.uniform(ks[1], (C, C), jnp.float32, -scale, scale)   # RNN weight_ih_l0
    w_hh  = jax.random.uniform(ks[2], (C, C), jnp.float32, -scale, scale)   # RNN weight_hh_l0
    b_ih  = jax.random.uniform(ks[3], (C,),   jnp.float32, -scale, scale)
    b_hh  = jax.random.uniform(ks[4], (C,),   jnp.float32, -scale, scale)
    fscal = 1.0 / jnp.sqrt(jnp.float32(S))
    w_fc  = jax.random.uniform(ks[5], (P, S), jnp.float32, -fscal, fscal)   # fc.weight
    b_fc  = jax.random.uniform(ks[6], (P,),   jnp.float32, -fscal, fscal)   # fc.bias

    params = prepare_params(w_ih, w_hh, b_ih, b_hh, w_fc, b_fc)   # one-time prep
    out = jax.block_until_ready(rnn_linear_forward(x, params))

    ref = ref_forward(x, w_ih, w_hh, b_ih, b_hh, w_fc, b_fc)
    assert out.shape == (B, P, C), out.shape
    # bf16 MXU operands through the S-step recurrence (f32 accum / tanh):
    # tolerance relaxed from 1e-4 to bf16-level as flagged in the review.
    err = float(jnp.max(jnp.abs(out - ref)))
    assert err < 5e-2, err

    print("KERNEL_OK")
</pallas_src>

<mosaic_0001>
module attributes {stable_mosaic.version = 11 : i64} {
  func.func @rnn_fc_kernel(%arg0: memref<16x32xf32, #tpu.memory_space<vmem>>, %arg1: memref<32x32xbf16, #tpu.memory_space<vmem>>, %arg2: memref<32x32xbf16, #tpu.memory_space<vmem>>, %arg3: memref<1x32xf32, #tpu.memory_space<vmem>>, %arg4: memref<4x8xf32, #tpu.memory_space<smem>>, %arg5: memref<4xf32, #tpu.memory_space<smem>>, %arg6: memref<2x128xf32, #tpu.memory_space<vmem>>) attributes {dimension_semantics = [], scalar_prefetch = 0 : i64, scratch_operands = 0 : i64, tpu.core_type = #tpu.core_type<tc>} {
    %c0 = arith.constant 0 : index
    %c0_0 = arith.constant 0 : index
    %0 = vector.load %arg0[%c0, %c0_0] : memref<16x32xf32, #tpu.memory_space<vmem>>, vector<16x32xf32>
    %1 = arith.truncf %0 : vector<16x32xf32> to vector<16x32xbf16>
    %c0_1 = arith.constant 0 : index
    %c0_2 = arith.constant 0 : index
    %2 = vector.load %arg1[%c0_1, %c0_2] : memref<32x32xbf16, #tpu.memory_space<vmem>>, vector<32x32xbf16>
    %cst = arith.constant dense<0.000000e+00> : vector<16x32xf32>
    %3 = tpu.matmul %1, %2, %cst {dimension_numbers = #tpu.dot_dimension_numbers<[1], [0], [0], [1], [0, 0, 1, 1], [], []>} : vector<16x32xbf16>, vector<32x32xbf16>, vector<16x32xf32> -> vector<16x32xf32>
    %c0_3 = arith.constant 0 : index
    %c0_4 = arith.constant 0 : index
    %4 = vector.load %arg3[%c0_3, %c0_4] : memref<1x32xf32, #tpu.memory_space<vmem>>, vector<1x32xf32>
    %5 = vector.broadcast %4 : vector<1x32xf32> to vector<16x32xf32>
    %6 = arith.addf %3, %5 : vector<16x32xf32>
    %c0_5 = arith.constant 0 : index
    %c0_6 = arith.constant 0 : index
    %7 = vector.load %arg2[%c0_5, %c0_6] : memref<32x32xbf16, #tpu.memory_space<vmem>>, vector<32x32xbf16>
    %8 = vector.extract_strided_slice %6 {offsets = [0, 0], sizes = [2, 32], strides = [1, 1]} : vector<16x32xf32> to vector<2x32xf32>
    %9 = math.tanh %8 : vector<2x32xf32>
    %c0_7 = arith.constant 0 : index
    %10 = memref.load %arg5[%c0_7] : memref<4xf32, #tpu.memory_space<smem>>
    %c0_8 = arith.constant 0 : index
    %c0_9 = arith.constant 0 : index
    %11 = memref.load %arg4[%c0_8, %c0_9] : memref<4x8xf32, #tpu.memory_space<smem>>
    %12 = vector.broadcast %11 : f32 to vector<2x32xf32>
    %13 = arith.mulf %12, %9 : vector<2x32xf32>
    %14 = vector.broadcast %10 : f32 to vector<2x32xf32>
    %15 = arith.addf %14, %13 : vector<2x32xf32>
    %c1 = arith.constant 1 : index
    %16 = memref.load %arg5[%c1] : memref<4xf32, #tpu.memory_space<smem>>
    %c1_10 = arith.constant 1 : index
    %c0_11 = arith.constant 0 : index
    %17 = memref.load %arg4[%c1_10, %c0_11] : memref<4x8xf32, #tpu.memory_space<smem>>
    %18 = vector.broadcast %17 : f32 to vector<2x32xf32>
    %19 = arith.mulf %18, %9 : vector<2x32xf32>
    %20 = vector.broadcast %16 : f32 to vector<2x32xf32>
    %21 = arith.addf %20, %19 : vector<2x32xf32>
    %c2 = arith.constant 2 : index
    %22 = memref.load %arg5[%c2] : memref<4xf32, #tpu.memory_space<smem>>
    %c2_12 = arith.constant 2 : index
    %c0_13 = arith.constant 0 : index
    %23 = memref.load %arg4[%c2_12, %c0_13] : memref<4x8xf32, #tpu.memory_space<smem>>
    %24 = vector.broadcast %23 : f32 to vector<2x32xf32>
    %25 = arith.mulf %24, %9 : vector<2x32xf32>
    %26 = vector.broadcast %22 : f32 to vector<2x32xf32>
    %27 = arith.addf %26, %25 : vector<2x32xf32>
    %c3 = arith.constant 3 : index
    %28 = memref.load %arg5[%c3] : memref<4xf32, #tpu.memory_space<smem>>
    %c3_14 = arith.constant 3 : index
    %c0_15 = arith.constant 0 : index
    %29 = memref.load %arg4[%c3_14, %c0_15] : memref<4x8xf32, #tpu.memory_space<smem>>
    %30 = vector.broadcast %29 : f32 to vector<2x32xf32>
    %31 = arith.mulf %30, %9 : vector<2x32xf32>
    %32 = vector.broadcast %28 : f32 to vector<2x32xf32>
    %33 = arith.addf %32, %31 : vector<2x32xf32>
    %34 = arith.truncf %9 : vector<2x32xf32> to vector<2x32xbf16>
    %cst_16 = arith.constant dense<0.000000e+00> : vector<2x32xf32>
    %35 = tpu.matmul %34, %7, %cst_16 {dimension_numbers = #tpu.dot_dimension_numbers<[1], [0], [0], [1], [0, 0, 1, 1], [], []>} : vector<2x32xbf16>, vector<32x32xbf16>, vector<2x32xf32> -> vector<2x32xf32>
    %36 = vector.extract_strided_slice %6 {offsets = [2, 0], sizes = [2, 32], strides = [1, 1]} : vector<16x32xf32> to vector<2x32xf32>
    %37 = arith.addf %36, %35 : vector<2x32xf32>
    %38 = math.tanh %37 : vector<2x32xf32>
    %c0_17 = arith.constant 0 : index
    %c1_18 = arith.constant 1 : index
    %39 = memref.load %arg4[%c0_17, %c1_18] : memref<4x8xf32, #tpu.memory_space<smem>>
    %40 = vector.broadcast %39 : f32 to vector<2x32xf32>
    %41 = arith.mulf %40, %38 : vector<2x32xf32>
    %42 = arith.addf %15, %41 : vector<2x32xf32>
    %c1_19 = arith.constant 1 : index
    %c1_20 = arith.constant 1 : index
    %43 = memref.load %arg4[%c1_19, %c1_20] : memref<4x8xf32, #tpu.memory_space<smem>>
    %44 = vector.broadcast %43 : f32 to vector<2x32xf32>
    %45 = arith.mulf %44, %38 : vector<2x32xf32>
    %46 = arith.addf %21, %45 : vector<2x32xf32>
    %c2_21 = arith.constant 2 : index
    %c1_22 = arith.constant 1 : index
    %47 = memref.load %arg4[%c2_21, %c1_22] : memref<4x8xf32, #tpu.memory_space<smem>>
    %48 = vector.broadcast %47 : f32 to vector<2x32xf32>
    %49 = arith.mulf %48, %38 : vector<2x32xf32>
    %50 = arith.addf %27, %49 : vector<2x32xf32>
    %c3_23 = arith.constant 3 : index
    %c1_24 = arith.constant 1 : index
    %51 = memref.load %arg4[%c3_23, %c1_24] : memref<4x8xf32, #tpu.memory_space<smem>>
    %52 = vector.broadcast %51 : f32 to vector<2x32xf32>
    %53 = arith.mulf %52, %38 : vector<2x32xf32>
    %54 = arith.addf %33, %53 : vector<2x32xf32>
    %55 = arith.truncf %38 : vector<2x32xf32> to vector<2x32xbf16>
    %cst_25 = arith.constant dense<0.000000e+00> : vector<2x32xf32>
    %56 = tpu.matmul %55, %7, %cst_25 {dimension_numbers = #tpu.dot_dimension_numbers<[1], [0], [0], [1], [0, 0, 1, 1], [], []>} : vector<2x32xbf16>, vector<32x32xbf16>, vector<2x32xf32> -> vector<2x32xf32>
    %57 = vector.extract_strided_slice %6 {offsets = [4, 0], sizes = [2, 32], strides = [1, 1]} : vector<16x32xf32> to vector<2x32xf32>
    %58 = arith.addf %57, %56 : vector<2x32xf32>
    %59 = math.tanh %58 : vector<2x32xf32>
    %c0_26 = arith.constant 0 : index
    %c2_27 = arith.constant 2 : index
    %60 = memref.load %arg4[%c0_26, %c2_27] : memref<4x8xf32, #tpu.memory_space<smem>>
    %61 = vector.broadcast %60 : f32 to vector<2x32xf32>
    %62 = arith.mulf %61, %59 : vector<2x32xf32>
    %63 = arith.addf %42, %62 : vector<2x32xf32>
    %c1_28 = arith.constant 1 : index
    %c2_29 = arith.constant 2 : index
    %64 = memref.load %arg4[%c1_28, %c2_29] : memref<4x8xf32, #tpu.memory_space<smem>>
    %65 = vector.broadcast %64 : f32 to vector<2x32xf32>
    %66 = arith.mulf %65, %59 : vector<2x32xf32>
    %67 = arith.addf %46, %66 : vector<2x32xf32>
    %c2_30 = arith.constant 2 : index
    %c2_31 = arith.constant 2 : index
    %68 = memref.load %arg4[%c2_30, %c2_31] : memref<4x8xf32, #tpu.memory_space<smem>>
    %69 = vector.broadcast %68 : f32 to vector<2x32xf32>
    %70 = arith.mulf %69, %59 : vector<2x32xf32>
    %71 = arith.addf %50, %70 : vector<2x32xf32>
    %c3_32 = arith.constant 3 : index
    %c2_33 = arith.constant 2 : index
    %72 = memref.load %arg4[%c3_32, %c2_33] : memref<4x8xf32, #tpu.memory_space<smem>>
    %73 = vector.broadcast %72 : f32 to vector<2x32xf32>
    %74 = arith.mulf %73, %59 : vector<2x32xf32>
    %75 = arith.addf %54, %74 : vector<2x32xf32>
    %76 = arith.truncf %59 : vector<2x32xf32> to vector<2x32xbf16>
    %cst_34 = arith.constant dense<0.000000e+00> : vector<2x32xf32>
    %77 = tpu.matmul %76, %7, %cst_34 {dimension_numbers = #tpu.dot_dimension_numbers<[1], [0], [0], [1], [0, 0, 1, 1], [], []>} : vector<2x32xbf16>, vector<32x32xbf16>, vector<2x32xf32> -> vector<2x32xf32>
    %78 = vector.extract_strided_slice %6 {offsets = [6, 0], sizes = [2, 32], strides = [1, 1]} : vector<16x32xf32> to vector<2x32xf32>
    %79 = arith.addf %78, %77 : vector<2x32xf32>
    %80 = math.tanh %79 : vector<2x32xf32>
    %c0_35 = arith.constant 0 : index
    %c3_36 = arith.constant 3 : index
    %81 = memref.load %arg4[%c0_35, %c3_36] : memref<4x8xf32, #tpu.memory_space<smem>>
    %82 = vector.broadcast %81 : f32 to vector<2x32xf32>
    %83 = arith.mulf %82, %80 : vector<2x32xf32>
    %84 = arith.addf %63, %83 : vector<2x32xf32>
    %c1_37 = arith.constant 1 : index
    %c3_38 = arith.constant 3 : index
    %85 = memref.load %arg4[%c1_37, %c3_38] : memref<4x8xf32, #tpu.memory_space<smem>>
    %86 = vector.broadcast %85 : f32 to vector<2x32xf32>
    %87 = arith.mulf %86, %80 : vector<2x32xf32>
    %88 = arith.addf %67, %87 : vector<2x32xf32>
    %c2_39 = arith.constant 2 : index
    %c3_40 = arith.constant 3 : index
    %89 = memref.load %arg4[%c2_39, %c3_40] : memref<4x8xf32, #tpu.memory_space<smem>>
    %90 = vector.broadcast %89 : f32 to vector<2x32xf32>
    %91 = arith.mulf %90, %80 : vector<2x32xf32>
    %92 = arith.addf %71, %91 : vector<2x32xf32>
    %c3_41 = arith.constant 3 : index
    %c3_42 = arith.constant 3 : index
    %93 = memref.load %arg4[%c3_41, %c3_42] : memref<4x8xf32, #tpu.memory_space<smem>>
    %94 = vector.broadcast %93 : f32 to vector<2x32xf32>
    %95 = arith.mulf %94, %80 : vector<2x32xf32>
    %96 = arith.addf %75, %95 : vector<2x32xf32>
    %97 = arith.truncf %80 : vector<2x32xf32> to vector<2x32xbf16>
    %cst_43 = arith.constant dense<0.000000e+00> : vector<2x32xf32>
    %98 = tpu.matmul %97, %7, %cst_43 {dimension_numbers = #tpu.dot_dimension_numbers<[1], [0], [0], [1], [0, 0, 1, 1], [], []>} : vector<2x32xbf16>, vector<32x32xbf16>, vector<2x32xf32> -> vector<2x32xf32>
    %99 = vector.extract_strided_slice %6 {offsets = [8, 0], sizes = [2, 32], strides = [1, 1]} : vector<16x32xf32> to vector<2x32xf32>
    %100 = arith.addf %99, %98 : vector<2x32xf32>
    %101 = math.tanh %100 : vector<2x32xf32>
    %c0_44 = arith.constant 0 : index
    %c4 = arith.constant 4 : index
    %102 = memref.load %arg4[%c0_44, %c4] : memref<4x8xf32, #tpu.memory_space<smem>>
    %103 = vector.broadcast %102 : f32 to vector<2x32xf32>
    %104 = arith.mulf %103, %101 : vector<2x32xf32>
    %105 = arith.addf %84, %104 : vector<2x32xf32>
    %c1_45 = arith.constant 1 : index
    %c4_46 = arith.constant 4 : index
    %106 = memref.load %arg4[%c1_45, %c4_46] : memref<4x8xf32, #tpu.memory_space<smem>>
    %107 = vector.broadcast %106 : f32 to vector<2x32xf32>
    %108 = arith.mulf %107, %101 : vector<2x32xf32>
    %109 = arith.addf %88, %108 : vector<2x32xf32>
    %c2_47 = arith.constant 2 : index
    %c4_48 = arith.constant 4 : index
    %110 = memref.load %arg4[%c2_47, %c4_48] : memref<4x8xf32, #tpu.memory_space<smem>>
    %111 = vector.broadcast %110 : f32 to vector<2x32xf32>
    %112 = arith.mulf %111, %101 : vector<2x32xf32>
    %113 = arith.addf %92, %112 : vector<2x32xf32>
    %c3_49 = arith.constant 3 : index
    %c4_50 = arith.constant 4 : index
    %114 = memref.load %arg4[%c3_49, %c4_50] : memref<4x8xf32, #tpu.memory_space<smem>>
    %115 = vector.broadcast %114 : f32 to vector<2x32xf32>
    %116 = arith.mulf %115, %101 : vector<2x32xf32>
    %117 = arith.addf %96, %116 : vector<2x32xf32>
    %118 = arith.truncf %101 : vector<2x32xf32> to vector<2x32xbf16>
    %cst_51 = arith.constant dense<0.000000e+00> : vector<2x32xf32>
    %119 = tpu.matmul %118, %7, %cst_51 {dimension_numbers = #tpu.dot_dimension_numbers<[1], [0], [0], [1], [0, 0, 1, 1], [], []>} : vector<2x32xbf16>, vector<32x32xbf16>, vector<2x32xf32> -> vector<2x32xf32>
    %120 = vector.extract_strided_slice %6 {offsets = [10, 0], sizes = [2, 32], strides = [1, 1]} : vector<16x32xf32> to vector<2x32xf32>
    %121 = arith.addf %120, %119 : vector<2x32xf32>
    %122 = math.tanh %121 : vector<2x32xf32>
    %c0_52 = arith.constant 0 : index
    %c5 = arith.constant 5 : index
    %123 = memref.load %arg4[%c0_52, %c5] : memref<4x8xf32, #tpu.memory_space<smem>>
    %124 = vector.broadcast %123 : f32 to vector<2x32xf32>
    %125 = arith.mulf %124, %122 : vector<2x32xf32>
    %126 = arith.addf %105, %125 : vector<2x32xf32>
    %c1_53 = arith.constant 1 : index
    %c5_54 = arith.constant 5 : index
    %127 = memref.load %arg4[%c1_53, %c5_54] : memref<4x8xf32, #tpu.memory_space<smem>>
    %128 = vector.broadcast %127 : f32 to vector<2x32xf32>
    %129 = arith.mulf %128, %122 : vector<2x32xf32>
    %130 = arith.addf %109, %129 : vector<2x32xf32>
    %c2_55 = arith.constant 2 : index
    %c5_56 = arith.constant 5 : index
    %131 = memref.load %arg4[%c2_55, %c5_56] : memref<4x8xf32, #tpu.memory_space<smem>>
    %132 = vector.broadcast %131 : f32 to vector<2x32xf32>
    %133 = arith.mulf %132, %122 : vector<2x32xf32>
    %134 = arith.addf %113, %133 : vector<2x32xf32>
    %c3_57 = arith.constant 3 : index
    %c5_58 = arith.constant 5 : index
    %135 = memref.load %arg4[%c3_57, %c5_58] : memref<4x8xf32, #tpu.memory_space<smem>>
    %136 = vector.broadcast %135 : f32 to vector<2x32xf32>
    %137 = arith.mulf %136, %122 : vector<2x32xf32>
    %138 = arith.addf %117, %137 : vector<2x32xf32>
    %139 = arith.truncf %122 : vector<2x32xf32> to vector<2x32xbf16>
    %cst_59 = arith.constant dense<0.000000e+00> : vector<2x32xf32>
    %140 = tpu.matmul %139, %7, %cst_59 {dimension_numbers = #tpu.dot_dimension_numbers<[1], [0], [0], [1], [0, 0, 1, 1], [], []>} : vector<2x32xbf16>, vector<32x32xbf16>, vector<2x32xf32> -> vector<2x32xf32>
    %141 = vector.extract_strided_slice %6 {offsets = [12, 0], sizes = [2, 32], strides = [1, 1]} : vector<16x32xf32> to vector<2x32xf32>
    %142 = arith.addf %141, %140 : vector<2x32xf32>
    %143 = math.tanh %142 : vector<2x32xf32>
    %c0_60 = arith.constant 0 : index
    %c6 = arith.constant 6 : index
    %144 = memref.load %arg4[%c0_60, %c6] : memref<4x8xf32, #tpu.memory_space<smem>>
    %145 = vector.broadcast %144 : f32 to vector<2x32xf32>
    %146 = arith.mulf %145, %143 : vector<2x32xf32>
    %147 = arith.addf %126, %146 : vector<2x32xf32>
    %c1_61 = arith.constant 1 : index
    %c6_62 = arith.constant 6 : index
    %148 = memref.load %arg4[%c1_61, %c6_62] : memref<4x8xf32, #tpu.memory_space<smem>>
    %149 = vector.broadcast %148 : f32 to vector<2x32xf32>
    %150 = arith.mulf %149, %143 : vector<2x32xf32>
    %151 = arith.addf %130, %150 : vector<2x32xf32>
    %c2_63 = arith.constant 2 : index
    %c6_64 = arith.constant 6 : index
    %152 = memref.load %arg4[%c2_63, %c6_64] : memref<4x8xf32, #tpu.memory_space<smem>>
    %153 = vector.broadcast %152 : f32 to vector<2x32xf32>
    %154 = arith.mulf %153, %143 : vector<2x32xf32>
    %155 = arith.addf %134, %154 : vector<2x32xf32>
    %c3_65 = arith.constant 3 : index
    %c6_66 = arith.constant 6 : index
    %156 = memref.load %arg4[%c3_65, %c6_66] : memref<4x8xf32, #tpu.memory_space<smem>>
    %157 = vector.broadcast %156 : f32 to vector<2x32xf32>
    %158 = arith.mulf %157, %143 : vector<2x32xf32>
    %159 = arith.addf %138, %158 : vector<2x32xf32>
    %160 = arith.truncf %143 : vector<2x32xf32> to vector<2x32xbf16>
    %cst_67 = arith.constant dense<0.000000e+00> : vector<2x32xf32>
    %161 = tpu.matmul %160, %7, %cst_67 {dimension_numbers = #tpu.dot_dimension_numbers<[1], [0], [0], [1], [0, 0, 1, 1], [], []>} : vector<2x32xbf16>, vector<32x32xbf16>, vector<2x32xf32> -> vector<2x32xf32>
    %162 = vector.extract_strided_slice %6 {offsets = [14, 0], sizes = [2, 32], strides = [1, 1]} : vector<16x32xf32> to vector<2x32xf32>
    %163 = arith.addf %162, %161 : vector<2x32xf32>
    %164 = math.tanh %163 : vector<2x32xf32>
    %c0_68 = arith.constant 0 : index
    %c7 = arith.constant 7 : index
    %165 = memref.load %arg4[%c0_68, %c7] : memref<4x8xf32, #tpu.memory_space<smem>>
    %166 = vector.broadcast %165 : f32 to vector<2x32xf32>
    %167 = arith.mulf %166, %164 : vector<2x32xf32>
    %168 = arith.addf %147, %167 : vector<2x32xf32>
    %c1_69 = arith.constant 1 : index
    %c7_70 = arith.constant 7 : index
    %169 = memref.load %arg4[%c1_69, %c7_70] : memref<4x8xf32, #tpu.memory_space<smem>>
    %170 = vector.broadcast %169 : f32 to vector<2x32xf32>
    %171 = arith.mulf %170, %164 : vector<2x32xf32>
    %172 = arith.addf %151, %171 : vector<2x32xf32>
    %c2_71 = arith.constant 2 : index
    %c7_72 = arith.constant 7 : index
    %173 = memref.load %arg4[%c2_71, %c7_72] : memref<4x8xf32, #tpu.memory_space<smem>>
    %174 = vector.broadcast %173 : f32 to vector<2x32xf32>
    %175 = arith.mulf %174, %164 : vector<2x32xf32>
    %176 = arith.addf %155, %175 : vector<2x32xf32>
    %c3_73 = arith.constant 3 : index
    %c7_74 = arith.constant 7 : index
    %177 = memref.load %arg4[%c3_73, %c7_74] : memref<4x8xf32, #tpu.memory_space<smem>>
    %178 = vector.broadcast %177 : f32 to vector<2x32xf32>
    %179 = arith.mulf %178, %164 : vector<2x32xf32>
    %180 = arith.addf %159, %179 : vector<2x32xf32>
    %181 = tpu.concatenate %168, %172, %176, %180 in 1 : vector<2x32xf32>, vector<2x32xf32>, vector<2x32xf32>, vector<2x32xf32> -> vector<2x128xf32>
    %c0_75 = arith.constant 0 : index
    %c0_76 = arith.constant 0 : index
    %182 = vector.load %arg6[%c0_75, %c0_76] : memref<2x128xf32, #tpu.memory_space<vmem>>, vector<2x128xf32>
    tpu.vector_store %arg6[%c0_75, %c0_76], %181 {strides = array<i32>} : memref<2x128xf32, #tpu.memory_space<vmem>>, vector<2x128xf32>,
    return
  }
}

</mosaic_0001>

<bundles_post_ra>
// kernel: rnn_linear_forward.1
= control target key start
LH: loop header
LB: loop body
LE: loop exit
PB: predicated region body
PF: predicated region fallthrough
CT: control target
= control target key end

     0   :  { %11 = vsyncpa [#allocation3], 0  ;;  %s762_s0 = inlined_call_operand.vmem [shape: f32[16,32], index: 0, kind: input, shape index: {}]   ;;  %s763_s1 = inlined_call_operand.vmem [shape: bf16[32,32], index: 1, kind: input, shape index: {}]   ;;  %s764_s2 = inlined_call_operand.vmem [shape: bf16[32,32], index: 2, kind: input, shape index: {}]   ;;  %s765_s3 = inlined_call_operand.hbm [shape: f32[1,32], index: 3, kind: input, shape index: {}]   ;;  %s766_s4 = inlined_call_operand.vmem [shape: f32[4,8], index: 4, kind: input, shape index: {}]   ;;  %s767_s5 = inlined_call_operand.hbm [shape: f32[4], index: 5, kind: input, shape index: {}]   ;;  %s768_s6 = inlined_call_operand.vmem [shape: f32[2,128], index: 6, kind: output, shape index: {}]  }
   0x1   :  { %12 = vsyncpa [#allocation5], 0  ;;  %s25_s23 = sshll.u32 %s765_s3, 4  ;;  %s26_s23 = int_to_ptr.hbm [resolvable:$true] %s25_s23 }
   0x2   :  { %13 = vsyncpa [#allocation4], 0  ;;  %s654_s24 = smov [#allocation2]   ;;  %s36_s28 = sshll.u32 %s766_s4, 4  ;;  %s37_s28 = int_to_ptr.vmem [resolvable:$true] %s36_s28 }
   0x3   :  { %s27_s25 = sshll.u32 %s654_s24, 4  ;;  %s655_s29 = smov [#allocation6]   ;;  %s28_s25 = int_to_ptr.vmem [resolvable:$true] %s27_s25 }
   0x4   :  { %30 = dma.hbm_to_vmem [thread:$0]  %s26_s23, 16, %s28_s25, [#allocation3]  }
   0x5   :  { %39 = dma.vmem_to_smem %s37_s28, 64, %s655_s29, [#allocation5]  }
   0x6   :  { %s45_s8 = sshll.u32 %s767_s5, 4  ;;  %s656_s9 = smov [#allocation7]   ;;  %s46_s8 = int_to_ptr.hbm [resolvable:$true] %s45_s8 }
   0x7   :  { %48 = dma.hbm_to_smem %s46_s8, 16, %s656_s9, [#allocation4]  }
   0x8   :  { %648 = dma.done.wait [#allocation3], 16  }
   0x9   :  { %649 = vsyncadd [#allocation3], 4294967280 }
   0xa   :  { %650 = dma.done.wait [#allocation5], 64  }
   0xb   :  { %651 = vsyncadd [#allocation5], 4294967232 }
   0xc   :  { %652 = dma.done.wait [#allocation4], 16  }
   0xd   :  { %653 = vsyncadd [#allocation4], 4294967280 }
   0xe   :  { %61 = sfence }
   0xf   :  { %v574_v0 = vld [vmem:[%s763_s1 + $0x8] sm:$0xff]  ;;  %v573_v1 = vld [vmem:[%s763_s1] sm:$0xff]  ;;  %vm86_vm0 = vcmask 261120   ;;  %s730_s18 = sld [smem:[#allocation7 + $0x3]]  ;;  %vm503_vm1 = vcmask 523264   ;;  %vm505_vm2 = vcmask 785408  }
  0x10   :  { %96 = vmatpush.bf16.msra.mxu0 %v574_v0  ;;  %v63_v2 = vld [vmem:[%s762_s0] sm:$0xff]  ;;  %v64_v3 = vld [vmem:[%s762_s0 + $0x8] sm:$0xff]  ;;  %s529_s0 = sld [smem:[#allocation6 + $0x180]] }
  0x11   :  { %v65_v4 = vpack.c.bf16 %v64_v3, %v63_v2  ;;  %v576_v5 = vld [vmem:[%s764_s2 + $0x8] sm:$0xff]  ;;  %v575_v6 = vld [vmem:[%s764_s2] sm:$0xff]  ;;  %s525_s2 = sld [smem:[#allocation6 + $0x80]] }
  0x12   :  { %155 = vmatpush.bf16.msra.mxu1 %v576_v5  ;;  %207 = vmatpush.bf16.msra.mxu2 %v576_v5  ;;  %v723_v7 = vld [vmem:[#allocation2] ss:$0 sm:$0xff]  ;;  %s732_s19 = sld [smem:[#allocation7 + $0x1]] }
  0x13   :  { %259 = vmatpush.bf16.msra.mxu3 %v576_v5  ;;  %s734_s20 = sld [smem:[#allocation7 + $0x2]] }
  0x14   :  { %97 = vmatpush.bf16.msra.mxu0 %v573_v1  ;;  %s527_s21 = sld [smem:[#allocation6 + $0x100]] }
  0x15   :  { %s110_s22 = sld [smem:[#allocation6]]  ;;  %v131_v26 = vstv %s730_s18 }
  0x16   :  { %156 = vmatpush.bf16.msra.mxu1 %v575_v6  ;;  %208 = vmatpush.bf16.msra.mxu2 %v575_v6  ;;  %s542_s23 = sld [smem:[#allocation6 + $0x181]]  ;;  %v129_v15 = vstv %s529_s0 }
  0x17   :  { %523 = vmatmul.msk.bf16.vlgmr.msra.gmra.mxu0 %vm86_vm0, %v65_v4  ;;  %260 = vmatpush.bf16.msra.mxu3 %v575_v6  ;;  %s540_s24 = sld [smem:[#allocation6 + $0x81]]  ;;  %v117_v16 = vstv %s525_s2 }
  0x18   :  { %311 = vmatpush.bf16.msrb.mxu0 %v576_v5  ;;  %s541_s25 = sld [smem:[#allocation6 + $0x101]]  ;;  %v119_v27 = vstv %s732_s19 }
  0x19   :  { %s539_s26 = sld [smem:[#allocation6 + $0x1]]  ;;  %v125_v28 = vstv %s734_s20 }
  0x1a   :  { %346 = vmatpush.bf16.msrb.mxu1 %v576_v5  ;;  %398 = vmatpush.bf16.msrb.mxu2 %v576_v5  ;;  %s737_s27 = sld [smem:[#allocation7]]  ;;  %v123_v17 = vstv %s527_s21 }
  0x1b   :  { %450 = vmatpush.bf16.msrb.mxu3 %v576_v5  ;;  %v111_v21 = vstv %s110_s22  ;;  %s547_s28 = sld [smem:[#allocation6 + $0x182]]  ;;  %s657_s22 = smov 96  }
  0x1c   :  { %312 = vmatpush.bf16.msrb.mxu0 %v575_v6  ;;  %v189_v22 = vstv %s542_s23  ;;  %s545_s29 = sld [smem:[#allocation6 + $0x82]]  ;;  %s658_s23 = smov 32  }
  0x1d   :  { %v175_v23 = vstv %s540_s24  ;;  %s546_s30 = sld [smem:[#allocation6 + $0x102]]  ;;  %s659_s24 = smov 64  }
  0x1e   :  { %347 = vmatpush.bf16.msrb.mxu1 %v575_v6  ;;  %399 = vmatpush.bf16.msrb.mxu2 %v575_v6  ;;  %v182_v25 = vstv %s541_s25  ;;  %s544_s7 = sld [smem:[#allocation6 + $0x2]] }
  0x1f   :  { %451 = vmatpush.bf16.msrb.mxu3 %v575_v6  ;;  %v168_v29 = vstv %s539_s26  ;;  %s552_s8 = sld [smem:[#allocation6 + $0x183]] }
  0x20   :  { %v113_v31 = vstv %s737_s27  ;;  %s550_s9 = sld [smem:[#allocation6 + $0x83]] }
  0x21   :  { %v241_v55 = vstv %s547_s28  ;;  %s551_s3 = sld [smem:[#allocation6 + $0x103]] }
  0x22   :  { %v227_v56 = vstv %s545_s29  ;;  %s549_s4 = sld [smem:[#allocation6 + $0x3]] }
  0x23   :  { %v234_v57 = vstv %s546_s30  ;;  %s557_s10 = sld [smem:[#allocation6 + $0x184]] }
  0x24   :  { %v220_v58 = vstv %s544_s7  ;;  %s555_s11 = sld [smem:[#allocation6 + $0x84]] }
  0x25   :  { %s556_s5 = sld [smem:[#allocation6 + $0x104]] }
  0x26   :  { %s554_s12 = sld [smem:[#allocation6 + $0x4]] }
  0x27   :  { %s562_s13 = sld [smem:[#allocation6 + $0x185]] }
  0x28   :  { %s560_s14 = sld [smem:[#allocation6 + $0x85]] }
  0x29   :  { %s561_s15 = sld [smem:[#allocation6 + $0x105]] }
  0x2a   :  { %s559_s16 = sld [smem:[#allocation6 + $0x5]] }
  0x2b   :  { %s567_s1 = sld [smem:[#allocation6 + $0x186]] }
  0x2c   :  { %s565_s17 = sld [smem:[#allocation6 + $0x86]] }
  0x2d   :  { %s566_s0 = sld [smem:[#allocation6 + $0x106]] }
  0x2e   :  { %s564_s2 = sld [smem:[#allocation6 + $0x6]] }
  0x2f   :  { %s572_s18 = sld [smem:[#allocation6 + $0x187]] }
  0x30   :  { %s570_s19 = sld [smem:[#allocation6 + $0x87]] }
  0x31   :  { %s569_s20 = sld [smem:[#allocation6 + $0x7]] }
  0x32   :  { %s571_s21 = sld [smem:[#allocation6 + $0x107]] }
  0x94   :  { %v99_v8 = vpop.f32.mrf.mxu0 }
  0x95   :  { %v726_v9 = vadd.f32 %v723_v7, %v99_v8 }
  0x97   :  { %584 = vtanh.f32 %v726_v9 }
  0x9d   :  { %v585_v10 = vpop.eup %584 }
  0x9e   :  { %v133_v11 = vpack.c.bf16 %v585_v10, %v585_v10  ;;  %v130_v19 = vmul.f32 %v585_v10, %v129_v15  ;;  %v118_v20 = vmul.f32 %v585_v10, %v117_v16  ;;  %v124_v24 = vmul.f32 %v585_v10, %v123_v17 }
  0x9f   :  { %v112_v32 = vmul.f32 %v585_v10, %v111_v21  ;;  %v293_v16 = vstv %s552_s8  ;;  %v279_v17 = vstv %s550_s9 }
  0xa0   :  { %538 = vmatmul.msk.bf16.vlgmr.msra.gmra.mxu1 %vm86_vm0, %v133_v11  ;;  %v132_v37 = vadd.f32 %v131_v26, %v130_v19  ;;  %v120_v38 = vadd.f32 %v119_v27, %v118_v20  ;;  %v126_v39 = vadd.f32 %v125_v28, %v124_v24  ;;  %v272_v19 = vstv %s549_s4 }
  0xa1   :  { %v114_v46 = vadd.f32 %v113_v31, %v112_v32 }
 0x11d   :  { %v158_v12 = vpop.f32.mrf.mxu1 }
 0x11e   :  { %v163_v13 = vrot.slane %v158_v12, 6 }
 0x120   :  { %v165_v14 = vadd.f32 %v163_v13, %v726_v9 }
 0x122   :  { %586 = vtanh.f32 %v165_v14 }
 0x125   :  { %v160_v18 = vpop.f32.mrf.mxu1 }
 0x126   :  { %v286_v18 = vstv %s551_s3 }
 0x128   :  { %v587_v30 = vpop.eup %586 }
 0x129   :  { %v195_v33 = vpack.c.bf16 %v587_v30, %v587_v30  ;;  %v190_v34 = vmul.f32 %v587_v30, %v189_v22  ;;  %v176_v35 = vmul.f32 %v587_v30, %v175_v23  ;;  %v183_v36 = vmul.f32 %v587_v30, %v182_v25 }
 0x12a   :  { %v169_v40 = vmul.f32 %v587_v30, %v168_v29 }
 0x12b   :  { %v197_v41 = vrot.slane %v195_v33, 1  ;;  %v192_v42 = vrot.slane %v190_v34, 2  ;;  %v178_v43 = vrot.slane %v176_v35, 2  ;;  %v185_v44 = vrot.slane %v183_v36, 2  ;;  %v101_v34 = vpop.f32.mrf.mxu0 }
 0x12c   :  { %v171_v45 = vrot.slane %v169_v40, 2  ;;  %v749_v35 = vadd.f32 %v723_v7, %v101_v34  ;;  %v329_v40 = vstv %s556_s5 }
 0x12d   :  { %543 = vmatmul.msk.bf16.vlgmr.msra.gmra.mxu2 %vm86_vm0, %v197_v41  ;;  %v194_v47 = vadd.f32 %v192_v42, %v132_v37  ;;  %v180_v48 = vadd.f32 %v178_v43, %v120_v38  ;;  %v187_v49 = vadd.f32 %v185_v44, %v126_v39  ;;  %v333_v38 = vstv %s557_s10 }
 0x12e   :  { %v173_v50 = vadd.f32 %v171_v45, %v114_v46  ;;  %v325_v39 = vstv %s555_s11  ;;  %v321_v42 = vstv %s554_s12 }
 0x1b0   :  { %v210_v51 = vpop.f32.mrf.mxu2 }
 0x1b1   :  { %v215_v52 = vrot.slane %v210_v51, 4 }
 0x1b3   :  { %v217_v53 = vadd.f32 %v215_v52, %v726_v9 }
 0x1b5   :  { %588 = vtanh.f32 %v217_v53 }
 0x1b8   :  { %v212_v54 = vpop.f32.mrf.mxu2 }
 0x1bb   :  { %v589_v59 = vpop.eup %588 }
 0x1bc   :  { %v247_v60 = vpack.c.bf16 %v589_v59, %v589_v59  ;;  %v242_v61 = vmul.f32 %v589_v59, %v241_v55  ;;  %v228_v62 = vmul.f32 %v589_v59, %v227_v56  ;;  %v235_v63 = vmul.f32 %v589_v59, %v234_v57 }
 0x1bd   :  { %v221_v0 = vmul.f32 %v589_v59, %v220_v58  ;;  %v380_v56 = vstv %s562_s13  ;;  %v366_v57 = vstv %s560_s14  ;;  %v373_v58 = vstv %s561_s15 }
 0x1be   :  { %v249_v1 = vrot.slane %v247_v60, 2  ;;  %v244_v2 = vrot.slane %v242_v61, 4  ;;  %v230_v3 = vrot.slane %v228_v62, 4  ;;  %v237_v4 = vrot.slane %v235_v63, 4 }
 0x1bf   :  { %v223_v5 = vrot.slane %v221_v0, 4  ;;  %v359_v59 = vstv %s559_s16 }
 0x1c0   :  { %548 = vmatmul.msk.bf16.vlgmr.msra.gmra.mxu3 %vm86_vm0, %v249_v1  ;;  %v246_v6 = vadd.f32 %v244_v2, %v194_v47  ;;  %v232_v8 = vadd.f32 %v230_v3, %v180_v48  ;;  %v239_v10 = vadd.f32 %v237_v4, %v187_v49 }
 0x1c1   :  { %v225_v11 = vadd.f32 %v223_v5, %v173_v50 }
 0x243   :  { %v262_v12 = vpop.f32.mrf.mxu3 }
 0x244   :  { %v267_v13 = vrot.slane %v262_v12, 2 }
 0x246   :  { %v269_v14 = vadd.f32 %v267_v13, %v726_v9 }
 0x248   :  { %590 = vtanh.f32 %v269_v14 }
 0x24b   :  { %v264_v15 = vpop.f32.mrf.mxu3 }
 0x24e   :  { %v591_v20 = vpop.eup %590 }
 0x24f   :  { %v299_v21 = vpack.c.bf16 %v591_v20, %v591_v20  ;;  %v294_v22 = vmul.f32 %v591_v20, %v293_v16  ;;  %v280_v23 = vmul.f32 %v591_v20, %v279_v17  ;;  %v287_v24 = vmul.f32 %v591_v20, %v286_v18 }
 0x250   :  { %v273_v25 = vmul.f32 %v591_v20, %v272_v19  ;;  %v432_v17 = vstv %s567_s1  ;;  %v418_v18 = vstv %s565_s17  ;;  %v425_v19 = vstv %s566_s0 }
 0x251   :  { %v301_v26 = vrot.slane %v299_v21, 3  ;;  %v296_v27 = vrot.slane %v294_v22, 6  ;;  %v282_v28 = vrot.slane %v280_v23, 6  ;;  %v289_v29 = vrot.slane %v287_v24, 6 }
 0x252   :  { %v275_v30 = vrot.slane %v273_v25, 6  ;;  %v411_v20 = vstv %s564_s2 }
 0x253   :  { %553 = vmatmul.msk.bf16.vlgmr.msrb.gmra.mxu0 %vm86_vm0, %v301_v26  ;;  %v298_v9 = vadd.f32 %v296_v27, %v246_v6  ;;  %v284_v31 = vadd.f32 %v282_v28, %v232_v8  ;;  %v291_v32 = vadd.f32 %v289_v29, %v239_v10 }
 0x254   :  { %v277_v33 = vadd.f32 %v275_v30, %v225_v11 }
 0x2d0   :  { %v314_v36 = vpop.f32.mrf.mxu0 }
 0x2d1   :  { %v318_v37 = vadd.f32 %v314_v36, %v749_v35 }
 0x2d3   :  { %592 = vtanh.f32 %v318_v37 }
 0x2d8   :  { %v316_v41 = vpop.f32.mrf.mxu0 }
 0x2d9   :  { %v593_v43 = vpop.eup %592  ;;  %v470_v41 = vstv %s570_s19 }
 0x2da   :  { %v336_v44 = vpack.c.bf16 %v593_v43, %v593_v43  ;;  %v334_v45 = vmul.f32 %v593_v43, %v333_v38  ;;  %v326_v46 = vmul.f32 %v593_v43, %v325_v39  ;;  %v330_v47 = vmul.f32 %v593_v43, %v329_v40 }
 0x2db   :  { %v322_v48 = vmul.f32 %v593_v43, %v321_v42  ;;  %v484_v40 = vstv %s572_s18  ;;  %v463_v42 = vstv %s569_s20 }
 0x2dc   :  { %558 = vmatmul.msk.bf16.vlgmr.msrb.gmra.mxu1 %vm86_vm0, %v336_v44  ;;  %v335_v7 = vadd.f32 %v334_v45, %v298_v9  ;;  %v327_v49 = vadd.f32 %v326_v46, %v284_v31  ;;  %v331_v50 = vadd.f32 %v330_v47, %v291_v32  ;;  %v477_v47 = vstv %s571_s21 }
 0x2dd   :  { %v323_v51 = vadd.f32 %v322_v48, %v277_v33 }
 0x359   :  { %v349_v52 = vpop.f32.mrf.mxu1 }
 0x35a   :  { %v354_v53 = vrot.slane %v349_v52, 6 }
 0x35c   :  { %v356_v54 = vadd.f32 %v354_v53, %v749_v35 }
 0x35e   :  { %594 = vtanh.f32 %v356_v54 }
 0x361   :  { %v351_v55 = vpop.f32.mrf.mxu1 }
 0x364   :  { %v595_v60 = vpop.eup %594 }
 0x365   :  { %v386_v61 = vpack.c.bf16 %v595_v60, %v595_v60  ;;  %v381_v62 = vmul.f32 %v595_v60, %v380_v56  ;;  %v367_v63 = vmul.f32 %v595_v60, %v366_v57  ;;  %v374_v0 = vmul.f32 %v595_v60, %v373_v58 }
 0x366   :  { %v360_v1 = vmul.f32 %v595_v60, %v359_v59 }
 0x367   :  { %v388_v2 = vrot.slane %v386_v61, 1  ;;  %v383_v3 = vrot.slane %v381_v62, 2  ;;  %v369_v4 = vrot.slane %v367_v63, 2  ;;  %v376_v5 = vrot.slane %v374_v0, 2 }
 0x368   :  { %v362_v6 = vrot.slane %v360_v1, 2 }
 0x369   :  { %563 = vmatmul.msk.bf16.vlgmr.msrb.gmra.mxu2 %vm86_vm0, %v388_v2  ;;  %v385_v8 = vadd.f32 %v383_v3, %v335_v7  ;;  %v371_v10 = vadd.f32 %v369_v4, %v327_v49  ;;  %v378_v11 = vadd.f32 %v376_v5, %v331_v50 }
 0x36a   :  { %v364_v12 = vadd.f32 %v362_v6, %v323_v51 }
 0x3ec   :  { %v401_v13 = vpop.f32.mrf.mxu2 }
 0x3ed   :  { %v406_v14 = vrot.slane %v401_v13, 4 }
 0x3ef   :  { %v408_v15 = vadd.f32 %v406_v14, %v749_v35 }
 0x3f1   :  { %596 = vtanh.f32 %v408_v15 }
 0x3f4   :  { %v403_v16 = vpop.f32.mrf.mxu2 }
 0x3f7   :  { %v597_v21 = vpop.eup %596 }
 0x3f8   :  { %v438_v22 = vpack.c.bf16 %v597_v21, %v597_v21  ;;  %v433_v23 = vmul.f32 %v597_v21, %v432_v17  ;;  %v419_v24 = vmul.f32 %v597_v21, %v418_v18  ;;  %v426_v25 = vmul.f32 %v597_v21, %v425_v19 }
 0x3f9   :  { %v412_v26 = vmul.f32 %v597_v21, %v411_v20 }
 0x3fa   :  { %v440_v27 = vrot.slane %v438_v22, 2  ;;  %v435_v28 = vrot.slane %v433_v23, 4  ;;  %v421_v29 = vrot.slane %v419_v24, 4  ;;  %v428_v30 = vrot.slane %v426_v25, 4 }
 0x3fb   :  { %v414_v9 = vrot.slane %v412_v26, 4 }
 0x3fc   :  { %568 = vmatmul.msk.bf16.vlgmr.msrb.gmra.mxu3 %vm86_vm0, %v440_v27  ;;  %v437_v31 = vadd.f32 %v435_v28, %v385_v8  ;;  %v423_v32 = vadd.f32 %v421_v29, %v371_v10  ;;  %v430_v33 = vadd.f32 %v428_v30, %v378_v11 }
 0x3fd   :  { %v416_v34 = vadd.f32 %v414_v9, %v364_v12 }
 0x47f   :  { %v453_v36 = vpop.f32.mrf.mxu3 }
 0x480   :  { %v458_v37 = vrot.slane %v453_v36, 2 }
 0x482   :  { %v460_v38 = vadd.f32 %v458_v37, %v749_v35 }
 0x484   :  { %598 = vtanh.f32 %v460_v38 }
 0x487   :  { %v455_v39 = vpop.f32.mrf.mxu3 }
 0x48a   :  { %v599_v43 = vpop.eup %598 }
 0x48b   :  { %v485_v44 = vmul.f32 %v599_v43, %v484_v40  ;;  %v471_v45 = vmul.f32 %v599_v43, %v470_v41  ;;  %v464_v46 = vmul.f32 %v599_v43, %v463_v42  ;;  %v478_v52 = vmul.f32 %v599_v43, %v477_v47 }
 0x48d   :  { %v487_v48 = vrot.slane %v485_v44, 6  ;;  %v473_v7 = vrot.slane %v471_v45, 6  ;;  %v466_v49 = vrot.slane %v464_v46, 6  ;;  %v480_v35 = vrot.slane %v478_v52, 6 }
 0x48f   :  { %v489_v50 = vadd.f32 %v487_v48, %v437_v31  ;;  %v475_v51 = vadd.f32 %v473_v7, %v423_v32  ;;  %v468_v53 = vadd.f32 %v466_v49, %v416_v34  ;;  %v482_v54 = vadd.f32 %v480_v35, %v430_v33 }
 0x491   :  { %499 = vrot.lane.b32.xlu1 %v489_v50, %s657_s22  ;;  %491 = vrot.lane.b32.xlu0 %v475_v51, %s658_s23 }
 0x499   :  { %495 = vrot.lane.b32.xlu0 %v482_v54, %s659_s24 }
 0x503   :  { %v492_v55 = vpop.permute.xlu0 %491  ;;  %v500_v58 = vpop.permute.xlu1 %499 }
 0x504   :  { %v502_v56 = vsel %vm86_vm0, %v468_v53, %v492_v55 }
 0x50b   :  { %v496_v57 = vpop.permute.xlu0 %495 }
 0x50c   :  { %v504_v59 = vsel %vm503_vm1, %v502_v56, %v496_v57 }
 0x50d   :  { %v506_v60 = vsel %vm505_vm2, %v504_v59, %v500_v58 }
 0x50e   :  { %507 = vst [vmem:[%s768_s6] sm:$0x3] %v506_v60 }
 0x50f   :  { %512 = vsyncpa [#allocation3], 1 }
 0x510   :  { %513 = vsyncpa [#allocation4], 1 }
 0x511   :  { %514 = vsyncpa [#allocation5], 1 }

</bundles_post_ra>
